<compile_context>
chip_gen: v7x
topology: tpu7x:2x2x1
jax: 0.10.0
libtpu: 0.0.40
codegen_flags: <defaults>
</compile_context>

<pallas_src>
import jax
import jax.numpy as jnp
from jax import lax
from jax.experimental import pallas as pl
from jax.experimental.pallas import tpu as pltpu

BN_EPS = 1e-5


def _round_up(n, m):
    return ((n + m - 1) // m) * m


def _mlp_kernel(x_ref,
                w1, b1, w2, b2, w3, b3, w4, b4, w5, b5,
                o_ref):
    """Fused forward: 4x (Linear + folded-BN + ReLU) + lane-dense Linear(64,1) + Sigmoid."""
    # x arrives f32 from HBM; cast to bf16 here (VPU work hidden under the MXU).
    x = x_ref[...].astype(jnp.bfloat16)                             # (TILE_B, 64) bf16

    # Block 1: Linear(64,128)+BN+ReLU  (Dropout(0.2) == identity in eval)
    h = jnp.dot(x, w1[...], preferred_element_type=jnp.float32) + b1[...]
    h = jnp.maximum(h.astype(jnp.bfloat16), 0.0)                    # (TILE_B, 128)

    # Block 2: Linear(128,256)+BN+ReLU (Dropout(0.3) == identity in eval)
    h = jnp.dot(h, w2[...], preferred_element_type=jnp.float32) + b2[...]
    h = jnp.maximum(h.astype(jnp.bfloat16), 0.0)                    # (TILE_B, 256)

    # Block 3: Linear(256,128)+BN+ReLU (Dropout(0.2) == identity in eval)
    h = jnp.dot(h, w3[...], preferred_element_type=jnp.float32) + b3[...]
    h = jnp.maximum(h.astype(jnp.bfloat16), 0.0)                    # (TILE_B, 128)

    # Block 4: Linear(128,64)+BN+ReLU
    h = jnp.dot(h, w4[...], preferred_element_type=jnp.float32) + b4[...]
    h = jnp.maximum(h.astype(jnp.bfloat16), 0.0)                    # (TILE_B, 64)

    # Head: Linear(64,1) + Sigmoid, computed transposed so output is lane-dense.
    # w5 is (8, 64) bf16 with the real weights in row 0 and zeros elsewhere.
    # Both operands contract their last (feature) dim -> q·kT-style matmul, no XLU
    # transpose of the (TILE_B, 64) activation.
    logits8 = lax.dot_general(
        w5[...], h, (((1,), (1,)), ((), ())),
        preferred_element_type=jnp.float32)                         # (8, TILE_B)
    logits = logits8[0:1, :] + b5[0, 0]                             # rows 1..7 are exactly 0
    o_ref[...] = jax.nn.sigmoid(logits)                             # (1, TILE_B) f32


def lidar_model_forward(x, params, tile_b=2048):
    """x: (B, 64) float32.  params: folded params from fold_params().  Returns (B, 1) f32."""
    w1, b1, w2, b2, w3, b3, w4, b4, w5, b5 = params
    B = x.shape[0]

    # Keep the tile a multiple of 128 (lane-dense output blocks) and guarantee >= 2 grid
    # steps whenever B allows it, so v7x's two TensorCores both get work.
    tile_b = max(128, min(tile_b, _round_up(pl.cdiv(B, 2), 128)))
    num_blocks = pl.cdiv(B, tile_b)            # ragged last block handled by Pallas
    Bp = num_blocks * tile_b

    grid = (num_blocks,)

    def resident(arr):                         # full array, DMA'd once, stays in VMEM
        return pl.BlockSpec(arr.shape, lambda i: (0, 0))

    weights = [w1, b1, w2, b2, w3, b3, w4, b4, w5]
    in_specs = [pl.BlockSpec((tile_b, 64), lambda i: (i, 0))]        # x, blocked over batch
    in_specs += [resident(a) for a in weights]
    in_specs += [pl.BlockSpec(memory_space=pltpu.MemorySpace.SMEM)]  # scalar head bias

    flops = 2 * Bp * (64 * 128 + 128 * 256 + 256 * 128 + 128 * 64 + 8 * 64)
    bytes_accessed = int(
        x.size * x.dtype.itemsize + Bp * 4 + 4
        + sum(int(a.size) * a.dtype.itemsize for a in weights))

    out = pl.pallas_call(
        _mlp_kernel,
        out_shape=jax.ShapeDtypeStruct((1, Bp), jnp.float32),        # lane-dense output slab
        grid=grid,
        in_specs=in_specs,
        out_specs=pl.BlockSpec((1, tile_b), lambda i: (0, i)),
        compiler_params=pltpu.CompilerParams(
            dimension_semantics=("parallel",),
            vmem_limit_bytes=32 * 1024 * 1024),
        cost_estimate=pl.CostEstimate(
            flops=flops, transcendentals=Bp, bytes_accessed=bytes_accessed),
    )(x, w1, b1, w2, b2, w3, b3, w4, b4, w5, b5)

    return out.reshape(Bp, 1)[:B]


def _fold_bn(gamma, beta, mean, var):
    scale = gamma / jnp.sqrt(var + BN_EPS)
    shift = beta - mean * scale
    return scale, shift


def fold_params(raw):
    """Fold eval-mode BatchNorm into the Linear layers; cast MXU operands to bf16.

    Note: BN scale is folded before the bf16 cast.  If a column's running variance is very
    small the folded weight magnitudes grow, but bf16 relative error is scale-invariant; if
    tighter accuracy is ever needed, keep W unscaled in bf16 and apply the f32 scale to the
    accumulator post-matmul instead.
    """
    (w1, b1, bn1), (w2, b2, bn2), (w3, b3, bn3), (w4, b4, bn4), (w5, b5) = raw
    folded = []
    for (w, b, bn) in ((w1, b1, bn1), (w2, b2, bn2), (w3, b3, bn3), (w4, b4, bn4)):
        gamma, beta, mean, var = bn
        scale, shift = _fold_bn(gamma, beta, mean, var)
        w_eff = (w * scale[None, :]).astype(jnp.bfloat16)            # (din, dout) bf16
        b_eff = (b * scale + shift).astype(jnp.float32)[None, :]     # (1, dout)   f32
        folded += [w_eff, b_eff]
    # Head: (64, 1) -> (8, 64) sublane-aligned row-0 weight, scalar bias in SMEM.
    w5_row = jnp.zeros((8, 64), jnp.float32).at[0, :].set(w5[:, 0])
    folded += [w5_row.astype(jnp.bfloat16),
               b5.reshape(1, 1).astype(jnp.float32)]
    return tuple(folded)


def init_raw_params(key):
    """Deterministic synthetic parameters matching the PyTorch module's shapes."""
    dims = [(64, 128), (128, 256), (256, 128), (128, 64), (64, 1)]
    keys = jax.random.split(key, 6 * len(dims))
    raw = []
    for i, (din, dout) in enumerate(dims):
        kw, kb, kg, kbe, km, kv = keys[6 * i:6 * i + 6]
        bound = din ** -0.5
        w = jax.random.uniform(kw, (din, dout), jnp.float32, -bound, bound)
        b = jax.random.uniform(kb, (dout,), jnp.float32, -bound, bound)
        if i < 4:  # first four Linear layers are followed by BatchNorm1d
            gamma = jax.random.uniform(kg, (dout,), jnp.float32, 0.5, 1.5)
            beta = 0.1 * jax.random.normal(kbe, (dout,), jnp.float32)
            mean = 0.1 * jax.random.normal(km, (dout,), jnp.float32)
            var = jax.random.uniform(kv, (dout,), jnp.float32, 0.5, 1.5)
            raw.append((w, b, (gamma, beta, mean, var)))
        else:
            raw.append((w, b))
    return raw


def reference_forward(x, raw):
    """Plain-JAX f32 reference (explicit eval-mode BatchNorm) for sanity checking."""
    (w1, b1, bn1), (w2, b2, bn2), (w3, b3, bn3), (w4, b4, bn4), (w5, b5) = raw
    h = x
    for (w, b, bn) in ((w1, b1, bn1), (w2, b2, bn2), (w3, b3, bn3), (w4, b4, bn4)):
        gamma, beta, mean, var = bn
        h = h @ w + b
        h = (h - mean) / jnp.sqrt(var + BN_EPS) * gamma + beta
        h = jnp.maximum(h, 0.0)
        # Dropout: identity in eval mode.
    return jax.nn.sigmoid(h @ w5 + b5)


if __name__ == "__main__":
    key = jax.random.PRNGKey(0)
    kx, kp = jax.random.split(key)

    B = 16  # small batch; BatchNorm1d implies a batch dimension
    x = jax.random.normal(kx, (B, 64), jnp.float32)
    raw = init_raw_params(kp)
    params = fold_params(raw)

    fwd = jax.jit(lidar_model_forward)
    out = jax.block_until_ready(fwd(x, params))
    ref = reference_forward(x, raw)

    assert out.shape == (B, 1), out.shape
    # bf16 matmul operands with f32 accumulation -> loosen tolerance vs f32 reference.
    assert jnp.allclose(out, ref, atol=2e-2, rtol=2e-2), float(jnp.max(jnp.abs(out - ref)))
    print("KERNEL_OK")
</pallas_src>

<mosaic_0001>
module attributes {stable_mosaic.version = 11 : i64} {
  func.func @_mlp_kernel(%arg0: i32, %arg1: memref<128x64xf32, #tpu.memory_space<vmem>>, %arg2: memref<64x128xbf16, #tpu.memory_space<vmem>>, %arg3: memref<1x128xf32, #tpu.memory_space<vmem>>, %arg4: memref<128x256xbf16, #tpu.memory_space<vmem>>, %arg5: memref<1x256xf32, #tpu.memory_space<vmem>>, %arg6: memref<256x128xbf16, #tpu.memory_space<vmem>>, %arg7: memref<1x128xf32, #tpu.memory_space<vmem>>, %arg8: memref<128x64xbf16, #tpu.memory_space<vmem>>, %arg9: memref<1x64xf32, #tpu.memory_space<vmem>>, %arg10: memref<8x64xbf16, #tpu.memory_space<vmem>>, %arg11: memref<1x1xf32, #tpu.memory_space<smem>>, %arg12: memref<1x128xf32, #tpu.memory_space<vmem>>) attributes {dimension_semantics = [#tpu.dimension_semantics<parallel>], iteration_bounds = array<i64: 1>, scalar_prefetch = 0 : i64, scratch_operands = 0 : i64, tpu.core_type = #tpu.core_type<tc>, window_params = [{transform_indices = @transform_0, window_bounds = array<i64: 128, 64>}, {pipeline_mode = #tpu.pipeline_mode<synchronous>, transform_indices = @transform_1, window_bounds = array<i64: 64, 128>}, {pipeline_mode = #tpu.pipeline_mode<synchronous>, transform_indices = @transform_2, window_bounds = array<i64: 1, 128>}, {pipeline_mode = #tpu.pipeline_mode<synchronous>, transform_indices = @transform_3, window_bounds = array<i64: 128, 256>}, {pipeline_mode = #tpu.pipeline_mode<synchronous>, transform_indices = @transform_4, window_bounds = array<i64: 1, 256>}, {pipeline_mode = #tpu.pipeline_mode<synchronous>, transform_indices = @transform_5, window_bounds = array<i64: 256, 128>}, {pipeline_mode = #tpu.pipeline_mode<synchronous>, transform_indices = @transform_6, window_bounds = array<i64: 1, 128>}, {pipeline_mode = #tpu.pipeline_mode<synchronous>, transform_indices = @transform_7, window_bounds = array<i64: 128, 64>}, {pipeline_mode = #tpu.pipeline_mode<synchronous>, transform_indices = @transform_8, window_bounds = array<i64: 1, 64>}, {pipeline_mode = #tpu.pipeline_mode<synchronous>, transform_indices = @transform_9, window_bounds = array<i64: 8, 64>}, {transform_indices = @transform_10, window_bounds = array<i64: 1, 1>}, {transform_indices = @transform_11, window_bounds = array<i64: 1, 128>}]} {
    %c0 = arith.constant 0 : index
    %c0_0 = arith.constant 0 : index
    %0 = vector.load %arg1[%c0, %c0_0] : memref<128x64xf32, #tpu.memory_space<vmem>>, vector<128x64xf32>
    %1 = arith.truncf %0 : vector<128x64xf32> to vector<128x64xbf16>
    %c0_1 = arith.constant 0 : index
    %c0_2 = arith.constant 0 : index
    %2 = vector.load %arg2[%c0_1, %c0_2] : memref<64x128xbf16, #tpu.memory_space<vmem>>, vector<64x128xbf16>
    %cst = arith.constant dense<0.000000e+00> : vector<128x128xf32>
    %3 = tpu.matmul %1, %2, %cst {dimension_numbers = #tpu.dot_dimension_numbers<[1], [0], [0], [1], [0, 0, 1, 1], [], []>} : vector<128x64xbf16>, vector<64x128xbf16>, vector<128x128xf32> -> vector<128x128xf32>
    %c0_3 = arith.constant 0 : index
    %c0_4 = arith.constant 0 : index
    %4 = vector.load %arg3[%c0_3, %c0_4] : memref<1x128xf32, #tpu.memory_space<vmem>>, vector<1x128xf32>
    %5 = vector.broadcast %4 : vector<1x128xf32> to vector<128x128xf32>
    %6 = arith.addf %3, %5 : vector<128x128xf32>
    %7 = arith.truncf %6 : vector<128x128xf32> to vector<128x128xbf16>
    %cst_5 = arith.constant 0.000000e+00 : bf16
    %8 = vector.broadcast %cst_5 : bf16 to vector<128x128xbf16>
    %9 = arith.maximumf %7, %8 : vector<128x128xbf16>
    %c0_6 = arith.constant 0 : index
    %c0_7 = arith.constant 0 : index
    %10 = vector.load %arg4[%c0_6, %c0_7] : memref<128x256xbf16, #tpu.memory_space<vmem>>, vector<128x256xbf16>
    %cst_8 = arith.constant dense<0.000000e+00> : vector<128x256xf32>
    %11 = tpu.matmul %9, %10, %cst_8 {dimension_numbers = #tpu.dot_dimension_numbers<[1], [0], [0], [1], [0, 0, 1, 1], [], []>} : vector<128x128xbf16>, vector<128x256xbf16>, vector<128x256xf32> -> vector<128x256xf32>
    %c0_9 = arith.constant 0 : index
    %c0_10 = arith.constant 0 : index
    %12 = vector.load %arg5[%c0_9, %c0_10] : memref<1x256xf32, #tpu.memory_space<vmem>>, vector<1x256xf32>
    %13 = vector.broadcast %12 : vector<1x256xf32> to vector<128x256xf32>
    %14 = arith.addf %11, %13 : vector<128x256xf32>
    %15 = arith.truncf %14 : vector<128x256xf32> to vector<128x256xbf16>
    %cst_11 = arith.constant 0.000000e+00 : bf16
    %16 = vector.broadcast %cst_11 : bf16 to vector<128x256xbf16>
    %17 = arith.maximumf %15, %16 : vector<128x256xbf16>
    %c0_12 = arith.constant 0 : index
    %c0_13 = arith.constant 0 : index
    %18 = vector.load %arg6[%c0_12, %c0_13] : memref<256x128xbf16, #tpu.memory_space<vmem>>, vector<256x128xbf16>
    %cst_14 = arith.constant dense<0.000000e+00> : vector<128x128xf32>
    %19 = tpu.matmul %17, %18, %cst_14 {dimension_numbers = #tpu.dot_dimension_numbers<[1], [0], [0], [1], [0, 0, 1, 1], [], []>} : vector<128x256xbf16>, vector<256x128xbf16>, vector<128x128xf32> -> vector<128x128xf32>
    %c0_15 = arith.constant 0 : index
    %c0_16 = arith.constant 0 : index
    %20 = vector.load %arg7[%c0_15, %c0_16] : memref<1x128xf32, #tpu.memory_space<vmem>>, vector<1x128xf32>
    %21 = vector.broadcast %20 : vector<1x128xf32> to vector<128x128xf32>
    %22 = arith.addf %19, %21 : vector<128x128xf32>
    %23 = arith.truncf %22 : vector<128x128xf32> to vector<128x128xbf16>
    %cst_17 = arith.constant 0.000000e+00 : bf16
    %24 = vector.broadcast %cst_17 : bf16 to vector<128x128xbf16>
    %25 = arith.maximumf %23, %24 : vector<128x128xbf16>
    %c0_18 = arith.constant 0 : index
    %c0_19 = arith.constant 0 : index
    %26 = vector.load %arg8[%c0_18, %c0_19] : memref<128x64xbf16, #tpu.memory_space<vmem>>, vector<128x64xbf16>
    %cst_20 = arith.constant dense<0.000000e+00> : vector<128x64xf32>
    %27 = tpu.matmul %25, %26, %cst_20 {dimension_numbers = #tpu.dot_dimension_numbers<[1], [0], [0], [1], [0, 0, 1, 1], [], []>} : vector<128x128xbf16>, vector<128x64xbf16>, vector<128x64xf32> -> vector<128x64xf32>
    %c0_21 = arith.constant 0 : index
    %c0_22 = arith.constant 0 : index
    %28 = vector.load %arg9[%c0_21, %c0_22] : memref<1x64xf32, #tpu.memory_space<vmem>>, vector<1x64xf32>
    %29 = vector.broadcast %28 : vector<1x64xf32> to vector<128x64xf32>
    %30 = arith.addf %27, %29 : vector<128x64xf32>
    %31 = arith.truncf %30 : vector<128x64xf32> to vector<128x64xbf16>
    %cst_23 = arith.constant 0.000000e+00 : bf16
    %32 = vector.broadcast %cst_23 : bf16 to vector<128x64xbf16>
    %33 = arith.maximumf %31, %32 : vector<128x64xbf16>
    %c0_24 = arith.constant 0 : index
    %c0_25 = arith.constant 0 : index
    %34 = vector.load %arg10[%c0_24, %c0_25] : memref<8x64xbf16, #tpu.memory_space<vmem>>, vector<8x64xbf16>
    %cst_26 = arith.constant dense<0.000000e+00> : vector<8x128xf32>
    %35 = tpu.matmul %34, %33, %cst_26 {dimension_numbers = #tpu.dot_dimension_numbers<[1], [1], [0], [0], [0, 0, 1, 0], [], []>} : vector<8x64xbf16>, vector<128x64xbf16>, vector<8x128xf32> -> vector<8x128xf32>
    %36 = vector.extract_strided_slice %35 {offsets = [0, 0], sizes = [1, 128], strides = [1, 1]} : vector<8x128xf32> to vector<1x128xf32>
    %c0_27 = arith.constant 0 : index
    %c0_28 = arith.constant 0 : index
    %37 = memref.load %arg11[%c0_27, %c0_28] : memref<1x1xf32, #tpu.memory_space<smem>>
    %38 = vector.broadcast %37 : f32 to vector<1x128xf32>
    %39 = arith.addf %36, %38 : vector<1x128xf32>
    %40 = arith.negf %39 : vector<1x128xf32>
    %41 = math.exp %40 : vector<1x128xf32>
    %cst_29 = arith.constant 1.000000e+00 : f32
    %42 = vector.broadcast %cst_29 : f32 to vector<1x128xf32>
    %43 = arith.addf %42, %41 : vector<1x128xf32>
    %44 = arith.divf %42, %43 : vector<1x128xf32>
    %c0_30 = arith.constant 0 : index
    %c0_31 = arith.constant 0 : index
    %45 = vector.load %arg12[%c0_30, %c0_31] : memref<1x128xf32, #tpu.memory_space<vmem>>, vector<1x128xf32>
    tpu.vector_store %arg12[%c0_30, %c0_31], %44 {strides = array<i32>} : memref<1x128xf32, #tpu.memory_space<vmem>>, vector<1x128xf32>,
    return
  }
  func.func @transform_0(%arg0: i32) -> (i32, i32) {
    %c0_i32 = arith.constant 0 : i32
    %c0_i32_0 = arith.constant 0 : i32
    return %arg0, %c0_i32 : i32, i32
  }
  func.func @transform_1(%arg0: i32) -> (i32, i32) {
    %c0_i32 = arith.constant 0 : i32
    %c0_i32_0 = arith.constant 0 : i32
    %c0_i32_1 = arith.constant 0 : i32
    return %c0_i32, %c0_i32_0 : i32, i32
  }
  func.func @transform_2(%arg0: i32) -> (i32, i32) {
    %c0_i32 = arith.constant 0 : i32
    %c0_i32_0 = arith.constant 0 : i32
    %c0_i32_1 = arith.constant 0 : i32
    return %c0_i32, %c0_i32_0 : i32, i32
  }
  func.func @transform_3(%arg0: i32) -> (i32, i32) {
    %c0_i32 = arith.constant 0 : i32
    %c0_i32_0 = arith.constant 0 : i32
    %c0_i32_1 = arith.constant 0 : i32
    return %c0_i32, %c0_i32_0 : i32, i32
  }
  func.func @transform_4(%arg0: i32) -> (i32, i32) {
    %c0_i32 = arith.constant 0 : i32
    %c0_i32_0 = arith.constant 0 : i32
    %c0_i32_1 = arith.constant 0 : i32
    return %c0_i32, %c0_i32_0 : i32, i32
  }
  func.func @transform_5(%arg0: i32) -> (i32, i32) {
    %c0_i32 = arith.constant 0 : i32
    %c0_i32_0 = arith.constant 0 : i32
    %c0_i32_1 = arith.constant 0 : i32
    return %c0_i32, %c0_i32_0 : i32, i32
  }
  func.func @transform_6(%arg0: i32) -> (i32, i32) {
    %c0_i32 = arith.constant 0 : i32
    %c0_i32_0 = arith.constant 0 : i32
    %c0_i32_1 = arith.constant 0 : i32
    return %c0_i32, %c0_i32_0 : i32, i32
  }
  func.func @transform_7(%arg0: i32) -> (i32, i32) {
    %c0_i32 = arith.constant 0 : i32
    %c0_i32_0 = arith.constant 0 : i32
    %c0_i32_1 = arith.constant 0 : i32
    return %c0_i32, %c0_i32_0 : i32, i32
  }
  func.func @transform_8(%arg0: i32) -> (i32, i32) {
    %c0_i32 = arith.constant 0 : i32
    %c0_i32_0 = arith.constant 0 : i32
    %c0_i32_1 = arith.constant 0 : i32
    return %c0_i32, %c0_i32_0 : i32, i32
  }
  func.func @transform_9(%arg0: i32) -> (i32, i32) {
    %c0_i32 = arith.constant 0 : i32
    %c0_i32_0 = arith.constant 0 : i32
    %c0_i32_1 = arith.constant 0 : i32
    return %c0_i32, %c0_i32_0 : i32, i32
  }
  func.func @transform_10(%arg0: i32) -> (i32, i32) {
    %c0_i32 = arith.constant 0 : i32
    %c0_i32_0 = arith.constant 0 : i32
    %c0_i32_1 = arith.constant 0 : i32
    return %c0_i32, %c0_i32_0 : i32, i32
  }
  func.func @transform_11(%arg0: i32) -> (i32, i32) {
    %c0_i32 = arith.constant 0 : i32
    %c0_i32_0 = arith.constant 0 : i32
    return %c0_i32, %arg0 : i32, i32
  }
}

</mosaic_0001>

<bundles_post_ra>
// kernel: lidar_model_forward.1
= control target key start
LH: loop header
LB: loop body
LE: loop exit
PB: predicated region body
PF: predicated region fallthrough
CT: control target
= control target key end

     0   :  { %17 = vsyncpa [#allocation4], 0  ;;  %s1711_s0 = inlined_call_operand.vmem [shape: f32[16,64], index: 0, kind: input, shape index: {}]   ;;  %s1712_s1 = inlined_call_operand.vmem [shape: bf16[64,128], index: 1, kind: input, shape index: {}]   ;;  %s1713_s2 = inlined_call_operand.vmem [shape: f32[1,128], index: 2, kind: input, shape index: {}]   ;;  %s1714_s3 = inlined_call_operand.hbm [shape: bf16[128,256], index: 3, kind: input, shape index: {}]   ;;  %s1715_s4 = inlined_call_operand.vmem [shape: f32[1,256], index: 4, kind: input, shape index: {}]   ;;  %s1716_s5 = inlined_call_operand.hbm [shape: bf16[256,128], index: 5, kind: input, shape index: {}]   ;;  %s1717_s6 = inlined_call_operand.vmem [shape: f32[1,128], index: 6, kind: input, shape index: {}]   ;;  %s1718_s7 = inlined_call_operand.vmem [shape: bf16[128,64], index: 7, kind: input, shape index: {}]   ;;  %s1719_s8 = inlined_call_operand.vmem [shape: f32[1,64], index: 8, kind: input, shape index: {}]   ;;  %s1720_s9 = inlined_call_operand.vmem [shape: bf16[8,64], index: 9, kind: input, shape index: {}]   ;;  %s1721_s10 = inlined_call_operand.<no memory space> [shape: f32[1,1], index: 10, kind: input, shape index: {}]   ;;  %s1722_s11 = inlined_call_operand.vmem [shape: f32[1,128], index: 11, kind: output, shape index: {}]  }
   0x1   :  { %18 = vsyncpa [#allocation6], 0  ;;  %s1385_s17 = smov [#allocation3]   ;;  %s1337_s21 = scalar_lea.hbm %s1714_s3, 2048 }
   0x2   :  { %s30_s18 = sshll.u32 %s1385_s17, 4  ;;  %p1338_p0 = scmp.ne.s32.totalorder %s1714_s3, %s1337_s21  ;;  %s31_s18 = int_to_ptr.vmem [resolvable:$true] %s30_s18 }
   0x3   :  { %p1341_p1 = scmp.lt.u32.totalorder %s1337_s21, %s1714_s3 }
   0x5   :  { %p1343_p2 = pnand %p1341_p1, %p1338_p0 }
   0x7   :  { %1346 = shalt.err (!%p1343_p2)
}
   0x8   :  { %s1347_s26 = scalar_lea.vmem %s31_s18, 2048  ;;  %p1352_p4 = scmp.lt.s32.totalorder %s31_s18, %s31_s18 }
   0x9   :  { %p1348_p3 = scmp.ne.s32.totalorder %s31_s18, %s1347_s26  ;;  %p1353_p5 = scmp.lt.s32.totalorder %s1347_s26, %s1347_s26 }
   0xb   :  { %p1354_p6 = por %p1353_p5, %p1352_p4 }
   0xd   :  { %p1355_p7 = pnand %p1354_p6, %p1348_p3 }
   0xf   :  { %1358 = shalt.err (!%p1355_p7)
}
  0x10   :  { %s1386_s27 = smov 128   ;;  %s1387_s28 = smov 8  }
  0x11   :  { %36 = dma.hbm_to_vmem [thread:$0]  %s1714_s3, 2048, %s31_s18, [#allocation4], %s1386_s27, %s1386_s27, %s1387_s28  }
  0x12   :  { %s1388_s12 = smov [#allocation5]   ;;  %s1359_s16 = scalar_lea.hbm %s1716_s5, 2048 }
  0x13   :  { %s44_s13 = sshll.u32 %s1388_s12, 4  ;;  %p1360_p8 = scmp.ne.s32.totalorder %s1716_s5, %s1359_s16  ;;  %s45_s13 = int_to_ptr.vmem [resolvable:$true] %s44_s13 }
  0x14   :  { %p1363_p9 = scmp.lt.u32.totalorder %s1359_s16, %s1716_s5 }
  0x16   :  { %p1365_p10 = pnand %p1363_p9, %p1360_p8 }
  0x18   :  { %1368 = shalt.err (!%p1365_p10)
}
  0x19   :  { %s1369_s22 = scalar_lea.vmem %s45_s13, 2048  ;;  %p1374_p12 = scmp.lt.s32.totalorder %s45_s13, %s45_s13 }
  0x1a   :  { %p1370_p11 = scmp.ne.s32.totalorder %s45_s13, %s1369_s22  ;;  %p1375_p13 = scmp.lt.s32.totalorder %s1369_s22, %s1369_s22 }
  0x1c   :  { %p1376_p0 = por %p1375_p13, %p1374_p12 }
  0x1e   :  { %p1377_p1 = pnand %p1376_p0, %p1370_p11 }
  0x20   :  { %1380 = shalt.err (!%p1377_p1)
}
  0x21   :  { %s1389_s3 = smov 64   ;;  %s1390_s18 = smov 4  }
  0x22   :  { %50 = dma.hbm_to_vmem [thread:$0]  %s1716_s5, 2048, %s45_s13, [#allocation6], %s1389_s3, %s1389_s3, %s1390_s18  }
  0x23   :  { %1381 = dma.done.wait [#allocation4], 2048  }
  0x24   :  { %1382 = vsyncadd [#allocation4], 4294965248 }
  0x25   :  { %1383 = dma.done.wait [#allocation6], 2048  }
  0x26   :  { %1384 = vsyncadd [#allocation6], 4294965248  ;;  %v1281_v0 = vld [vmem:[%s1712_s1] sm:$0xff]   ;;  %v1282_v1 = vld [vmem:[%s1712_s1 + $0x8] sm:$0xff]   ;;  %vm131_vm0 = vcmask 523264   ;;  %v1391_v44 = vmov 0  }
  0x27   :  { %1196 = vmatprep.subr.bf16.mxu0 %v1281_v0  ;;  %v1283_v2 = vld [vmem:[%s1712_s1 + $0x10] sm:$0xff]   ;;  %v68_v3 = vld [vmem:[%s1711_s0] sm:$0xff]  ;;  %v69_v4 = vld [vmem:[%s1711_s0 + $0x8] sm:$0xff]  ;;  %409 = vmatprep.mubr.bf16.mxu1 %v1391_v44  ;;  %vm1393_vm1 = vmmov 0  }
  0x28   :  { %1197 = vmatpush3.bf16.msra.mxu0 %v1281_v0  ;;  %v84_v5 = vpack.c.bf16 %v69_v4, %v68_v3  ;;  %v1284_v6 = vld [vmem:[%s1712_s1 + $0x18] sm:$0xff]   ;;  %v70_v7 = vld [vmem:[%s1711_s0 + $0x10] sm:$0xff]  ;;  %v1285_v9 = vld [vmem:[#allocation3 + $0x4] ss:$8 sps:$4 sm:$0xff]  }
  0x29   :  { %1198 = vmatprep.subr.bf16.mxu0 %v1282_v1  ;;  %v71_v8 = vld [vmem:[%s1711_s0 + $0x18] sm:$0xff]  ;;  %v1287_v10 = vld [vmem:[#allocation3] ss:$8 sps:$4 sm:$0xff]   ;;  %377 = vmatprep.subr.bf16.mxu1 %v1285_v9  ;;  %v1291_v16 = vld [vmem:[#allocation3 + $0x24] ss:$8 sps:$4 sm:$0xff]  }
  0x2a   :  { %1204 = vmatprep.mubr.msk.bf16.mxu0 %vm131_vm0, %v84_v5  ;;  %v72_v11 = vld [vmem:[%s1711_s0 + $0x20] sm:$0xff]  ;;  %v1288_v12 = vld [vmem:[#allocation3 + $0x14] ss:$8 sps:$4 sm:$0xff]   ;;  %v73_v13 = vld [vmem:[%s1711_s0 + $0x28] sm:$0xff]  ;;  %378 = vmatpush1.bf16.msra.mxu1 %v1287_v10  ;;  %v85_v15 = vpack.c.bf16 %v71_v8, %v70_v7 }
  0x2b   :  { %v1290_v14 = vld [vmem:[#allocation3 + $0x10] ss:$8 sps:$4 sm:$0xff]   ;;  %379 = vmatprep.subr.bf16.mxu1 %v1288_v12  ;;  %v86_v17 = vpack.c.bf16 %v73_v13, %v72_v11  ;;  %v1293_v18 = vld [vmem:[#allocation3 + $0x20] ss:$8 sps:$4 sm:$0xff]   ;;  %v1294_v21 = vld [vmem:[#allocation3 + $0x34] ss:$8 sps:$4 sm:$0xff]  }
  0x2c   :  { %1199 = vmatpush3.bf16.msra.mxu0 %v1282_v1  ;;  %v74_v19 = vld [vmem:[%s1711_s0 + $0x30] sm:$0xff]  ;;  %v75_v20 = vld [vmem:[%s1711_s0 + $0x38] sm:$0xff]  ;;  %v76_v22 = vld [vmem:[%s1711_s0 + $0x40] sm:$0xff] }
  0x2d   :  { %1200 = vmatprep.subr.bf16.mxu0 %v1283_v2  ;;  %v77_v23 = vld [vmem:[%s1711_s0 + $0x48] sm:$0xff]  ;;  %v1296_v24 = vld [vmem:[#allocation3 + $0x30] ss:$8 sps:$4 sm:$0xff]   ;;  %v87_v26 = vpack.c.bf16 %v75_v20, %v74_v19  ;;  %v1300_v29 = vld [vmem:[#allocation3 + $0x54] ss:$8 sps:$4 sm:$0xff]  }
  0x2e   :  { %380 = vmatpush1.bf16.msra.mxu1 %v1290_v14  ;;  %v1297_v25 = vld [vmem:[#allocation3 + $0x44] ss:$8 sps:$4 sm:$0xff]   ;;  %v88_v27 = vpack.c.bf16 %v77_v23, %v76_v22  ;;  %v1299_v28 = vld [vmem:[#allocation3 + $0x40] ss:$8 sps:$4 sm:$0xff]   ;;  %v78_v30 = vld [vmem:[%s1711_s0 + $0x50] sm:$0xff] }
  0x2f   :  { %381 = vmatprep.subr.bf16.mxu1 %v1291_v16  ;;  %v79_v31 = vld [vmem:[%s1711_s0 + $0x58] sm:$0xff]  ;;  %v80_v32 = vld [vmem:[%s1711_s0 + $0x60] sm:$0xff]  ;;  %v81_v33 = vld [vmem:[%s1711_s0 + $0x68] sm:$0xff] }
  0x30   :  { %1201 = vmatpush3.bf16.msra.mxu0 %v1283_v2  ;;  %v1302_v34 = vld [vmem:[#allocation3 + $0x50] ss:$8 sps:$4 sm:$0xff]   ;;  %v89_v35 = vpack.c.bf16 %v79_v31, %v78_v30  ;;  %v90_v36 = vpack.c.bf16 %v81_v33, %v80_v32  ;;  %v1303_v40 = vld [vmem:[#allocation3 + $0x64] ss:$8 sps:$4 sm:$0xff]   ;;  %v1305_v41 = vld [vmem:[#allocation3 + $0x60] ss:$8 sps:$4 sm:$0xff]  }
  0x31   :  { %1202 = vmatprep.subr.bf16.mxu0 %v1284_v6  ;;  %v82_v37 = vld [vmem:[%s1711_s0 + $0x70] sm:$0xff]  ;;  %v83_v38 = vld [vmem:[%s1711_s0 + $0x78] sm:$0xff]  ;;  %v1309_v45 = vld [vmem:[#allocation5 + $0x40] sm:$0xff]  }
  0x32   :  { %382 = vmatpush1.bf16.msra.mxu1 %v1293_v18  ;;  %v91_v39 = vpack.c.bf16 %v83_v38, %v82_v37  ;;  %v1306_v42 = vld [vmem:[#allocation3 + $0x74] ss:$8 sps:$4 sm:$0xff]   ;;  %v1308_v43 = vld [vmem:[#allocation3 + $0x70] ss:$8 sps:$4 sm:$0xff]   ;;  %v1310_v46 = vld [vmem:[#allocation5] sm:$0xff]  }
  0x33   :  { %383 = vmatprep.subr.bf16.mxu1 %v1294_v21  ;;  %v1311_v47 = vld [vmem:[#allocation5 + $0x48] sm:$0xff]   ;;  %v1313_v49 = vld [vmem:[#allocation5 + $0x50] sm:$0xff]   ;;  %v1315_v51 = vld [vmem:[#allocation5 + $0x58] sm:$0xff]  }
  0x34   :  { %1203 = vmatpush3.bf16.msra.mxu0 %v1284_v6  ;;  %v1312_v48 = vld [vmem:[#allocation5 + $0x8] sm:$0xff]   ;;  %v1314_v50 = vld [vmem:[#allocation5 + $0x10] sm:$0xff]   ;;  %v1316_v52 = vld [vmem:[#allocation5 + $0x18] sm:$0xff]  }
  0x35   :  { %1107 = vmatprep.subr.bf16.mxu0 %v1309_v45  ;;  %v1317_v53 = vld [vmem:[#allocation5 + $0x60] sm:$0xff]   ;;  %v1319_v55 = vld [vmem:[#allocation5 + $0x68] sm:$0xff]   ;;  %v1323_v45 = vld [vmem:[#allocation5 + $0x78] sm:$0xff]  }
  0x36   :  { %384 = vmatpush1.bf16.msra.mxu1 %v1296_v24  ;;  %v1318_v54 = vld [vmem:[#allocation5 + $0x20] sm:$0xff]  }
  0x37   :  { %1205 = vmatmul.mubr.msk.bf16.vlgmr.msra.gmra.mrb[0].mxu0 %vm131_vm0, %v85_v15  ;;  %385 = vmatprep.subr.bf16.mxu1 %v1297_v25  ;;  %v1038_v57 = vld [vmem:[%s1713_s2] ss:$0 sm:$0xff] }
  0x38   :  { %1208 = vmatprep.mubr.msk.bf16.mxu0 %vm131_vm0, %v86_v17  ;;  %1108 = vmatpush3.bf16.msra.mxu0 %v1310_v46  ;;  %v1324_v46 = vld [vmem:[#allocation5 + $0x38] sm:$0xff]  }
  0x39   :  { %1109 = vmatprep.subr.bf16.mxu0 %v1311_v47  ;;  %v1325_v47 = vld [vmem:[%s1718_s7] sm:$0xff]  }
  0x3a   :  { %386 = vmatpush1.bf16.msra.mxu1 %v1299_v28 }
  0x3b   :  { %387 = vmatprep.subr.bf16.mxu1 %v1300_v29 }
  0x3c   :  { %1110 = vmatpush3.bf16.msra.mxu0 %v1312_v48  ;;  %v1326_v48 = vld [vmem:[%s1718_s7 + $0x8] sm:$0xff]  }
  0x3d   :  { %1111 = vmatprep.subr.bf16.mxu0 %v1313_v49  ;;  %v1327_v49 = vld [vmem:[%s1718_s7 + $0x10] sm:$0xff]  }
  0x3e   :  { %388 = vmatpush1.bf16.msra.mxu1 %v1302_v34 }
  0x3f   :  { %1209 = vmatmul.mubr.msk.bf16.gmra.mrb[4].mxu0 %vm131_vm0, %v87_v26  ;;  %389 = vmatprep.subr.bf16.mxu1 %v1303_v40 }
  0x40   :  { %1212 = vmatprep.mubr.msk.bf16.mxu0 %vm131_vm0, %v88_v27  ;;  %1112 = vmatpush3.bf16.msra.mxu0 %v1314_v50  ;;  %v1328_v50 = vld [vmem:[%s1718_s7 + $0x18] sm:$0xff]  }
  0x41   :  { %1113 = vmatprep.subr.bf16.mxu0 %v1315_v51  ;;  %v1329_v51 = vld [vmem:[%s1718_s7 + $0x20] sm:$0xff]  }
  0x42   :  { %390 = vmatpush1.bf16.msra.mxu1 %v1305_v41  ;;  %v1320_v41 = vld [vmem:[#allocation5 + $0x28] sm:$0xff]  }
  0x43   :  { %391 = vmatprep.subr.bf16.mxu1 %v1306_v42  ;;  %v1321_v42 = vld [vmem:[#allocation5 + $0x70] sm:$0xff]  }
  0x44   :  { %1114 = vmatpush3.bf16.msra.mxu0 %v1316_v52  ;;  %v1330_v52 = vld [vmem:[%s1718_s7 + $0x28] sm:$0xff]  }
  0x45   :  { %1115 = vmatprep.subr.bf16.mxu0 %v1317_v53  ;;  %v287_v53 = vlaneseq }
  0x46   :  { %392 = vmatpush1.bf16.msra.mxu1 %v1308_v43  ;;  %v1322_v43 = vld [vmem:[#allocation5 + $0x30] sm:$0xff]  }
  0x47   :  { %1213 = vmatmul.mubr.msk.bf16.gmra.mrb[8].mxu0 %vm131_vm0, %v89_v35  ;;  %1220 = vmatprep.subr.bf16.mxu1 %v1325_v47 }
  0x48   :  { %1216 = vmatprep.mubr.msk.bf16.mxu0 %vm131_vm0, %v90_v36  ;;  %1116 = vmatpush3.bf16.msra.mxu0 %v1318_v54  ;;  %v288_v54 = vshrl.u32 %v287_v53, 7 }
  0x49   :  { %1117 = vmatprep.subr.bf16.mxu0 %v1319_v55 }
  0x4a   :  { %v289_v55 = vsub.s32 0, %v288_v54 }
  0x4c   :  { %1118 = vmatpush3.bf16.msra.mxu0 %v1320_v41 }
  0x4d   :  { %1119 = vmatprep.subr.bf16.mxu0 %v1321_v42 }
  0x4f   :  { %1217 = vmatmul.mubr.msk.bf16.gmra.mrb[12].mxu0 %vm131_vm0, %v91_v39 }
  0x50   :  { %1120 = vmatpush3.bf16.msra.mxu0 %v1322_v43 }
  0x51   :  { %1121 = vmatprep.subr.bf16.mxu0 %v1323_v45 }
  0x54   :  { %1122 = vmatpush3.bf16.msra.mxu0 %v1324_v46 }
 0x10a   :  { %v1206_v56 = vpop.f32.mrb[0].mxu0 }
 0x10b   :  { %v190_v58 = vpop.f32.mrb[1].mxu0  ;;  %v199_v60 = vadd.f32 %v1206_v56, %v1038_v57  ;;  %v285_v56 = vld [vmem:[%s1715_s4] sm:$0x3] }
 0x10c   :  { %v1207_v59 = vpop.f32.mrb[2].mxu0  ;;  %v191_v63 = vadd.f32 %v1038_v57, %v190_v58  ;;  %v1586_v58 = vrot.slane %v285_v56, %v289_v55 }
 0x10d   :  { %v202_v61 = vadd.f32 %v1207_v59, %v1038_v57  ;;  %v193_v62 = vpop.f32.mrb[3].mxu0 }
 0x10e   :  { %v194_v0 = vadd.f32 %v1038_v57, %v193_v62 }
 0x10f   :  { %v254_v1 = vpack.c.bf16 %v202_v61, %v199_v60 }
 0x110   :  { %v253_v2 = vpack.c.bf16 %v194_v0, %v191_v63 }
 0x111   :  { %v262_v14 = vmax.bf16 %v1391_v44, %v254_v1 }
 0x112   :  { %v261_v3 = vmax.bf16 %v1391_v44, %v253_v2  ;;  %v1210_v4 = vpop.f32.mrb[4].mxu0 }
 0x113   :  { %v215_v5 = vadd.f32 %v1210_v4, %v1038_v57  ;;  %v206_v6 = vpop.f32.mrb[5].mxu0 }
 0x114   :  { %410 = vmatmul.mubr.bf16.vlgmr.msra.gmra.mrb[0].mxu1 %v261_v3  ;;  %v207_v7 = vadd.f32 %v1038_v57, %v206_v6  ;;  %v1211_v8 = vpop.f32.mrb[6].mxu0 }
 0x115   :  { %v218_v9 = vadd.f32 %v1211_v8, %v1038_v57  ;;  %v209_v10 = vpop.f32.mrb[7].mxu0  ;;  %419 = vmatprep.mubr.bf16.mxu1 %v1391_v44  ;;  %1221 = vmatpush3.bf16.msra.mxu1 %v1325_v47 }
 0x116   :  { %v210_v11 = vadd.f32 %v1038_v57, %v209_v10  ;;  %1222 = vmatprep.subr.bf16.mxu1 %v1326_v48 }
 0x117   :  { %v256_v12 = vpack.c.bf16 %v218_v9, %v215_v5 }
 0x118   :  { %v255_v13 = vpack.c.bf16 %v210_v11, %v207_v7 }
 0x119   :  { %v264_v36 = vmax.bf16 %v1391_v44, %v256_v12  ;;  %1223 = vmatpush3.bf16.msra.mxu1 %v1326_v48 }
 0x11a   :  { %v1214_v15 = vpop.f32.mrb[8].mxu0  ;;  %v263_v25 = vmax.bf16 %v1391_v44, %v255_v13  ;;  %1224 = vmatprep.subr.bf16.mxu1 %v1327_v49 }
 0x11b   :  { %v231_v16 = vadd.f32 %v1214_v15, %v1038_v57  ;;  %v222_v17 = vpop.f32.mrb[9].mxu0 }
 0x11c   :  { %420 = vmatmul.mubr.bf16.gmra.mrb[4].mxu1 %v262_v14  ;;  %v223_v18 = vadd.f32 %v1038_v57, %v222_v17  ;;  %v1215_v19 = vpop.f32.mrb[10].mxu0 }
 0x11d   :  { %429 = vmatprep.mubr.bf16.mxu1 %v1391_v44  ;;  %v234_v20 = vadd.f32 %v1215_v19, %v1038_v57  ;;  %v225_v21 = vpop.f32.mrb[11].mxu0  ;;  %1225 = vmatpush3.bf16.msra.mxu1 %v1327_v49 }
 0x11e   :  { %v226_v22 = vadd.f32 %v1038_v57, %v225_v21  ;;  %1226 = vmatprep.subr.bf16.mxu1 %v1328_v50 }
 0x11f   :  { %v258_v23 = vpack.c.bf16 %v234_v20, %v231_v16 }
 0x120   :  { %v257_v24 = vpack.c.bf16 %v226_v22, %v223_v18 }
 0x121   :  { %v266_v38 = vmax.bf16 %v1391_v44, %v258_v23  ;;  %1227 = vmatpush3.bf16.msra.mxu1 %v1328_v50 }
 0x122   :  { %v1218_v26 = vpop.f32.mrb[12].mxu0  ;;  %v265_v37 = vmax.bf16 %v1391_v44, %v257_v24  ;;  %1228 = vmatprep.subr.bf16.mxu1 %v1329_v51 }
 0x123   :  { %v247_v27 = vadd.f32 %v1218_v26, %v1038_v57  ;;  %v238_v28 = vpop.f32.mrb[13].mxu0 }
 0x124   :  { %430 = vmatmul.mubr.bf16.gmra.mrb[8].mxu1 %v263_v25  ;;  %v239_v29 = vadd.f32 %v1038_v57, %v238_v28  ;;  %v1219_v30 = vpop.f32.mrb[14].mxu0 }
 0x125   :  { %439 = vmatprep.mubr.bf16.mxu1 %v1391_v44  ;;  %v250_v31 = vadd.f32 %v1219_v30, %v1038_v57  ;;  %v241_v32 = vpop.f32.mrb[15].mxu0  ;;  %1229 = vmatpush3.bf16.msra.mxu1 %v1329_v51 }
 0x126   :  { %v242_v33 = vadd.f32 %v1038_v57, %v241_v32  ;;  %1230 = vmatprep.subr.bf16.mxu1 %v1330_v52  ;;  %v293_v57 = vsub.s32 1, %v288_v54 }
 0x127   :  { %v260_v34 = vpack.c.bf16 %v250_v31, %v247_v27 }
 0x128   :  { %v259_v35 = vpack.c.bf16 %v242_v33, %v239_v29  ;;  %v1588_v60 = vrot.slane %v285_v56, %v293_v57 }
 0x129   :  { %v268_v40 = vmax.bf16 %v1391_v44, %v260_v34  ;;  %1231 = vmatpush3.bf16.msra.mxu1 %v1330_v52 }
 0x12a   :  { %v267_v39 = vmax.bf16 %v1391_v44, %v259_v35 }
 0x12c   :  { %440 = vmatmul.mubr.bf16.gmra.mrb[12].mxu1 %v264_v36 }
 0x12d   :  { %449 = vmatprep.mubr.bf16.mxu1 %v1391_v44 }
 0x134   :  { %450 = vmatmul.mubr.bf16.gmra.mrb[16].mxu1 %v265_v37 }
 0x135   :  { %459 = vmatprep.mubr.bf16.mxu1 %v1391_v44 }
 0x13c   :  { %460 = vmatmul.mubr.bf16.gmra.mrb[20].mxu1 %v266_v38 }
 0x13d   :  { %469 = vmatprep.mubr.bf16.mxu1 %v1391_v44 }
 0x144   :  { %470 = vmatmul.mubr.bf16.gmra.mrb[24].mxu1 %v267_v39 }
 0x145   :  { %479 = vmatprep.mubr.bf16.mxu1 %v1391_v44 }
 0x14c   :  { %480 = vmatmul.mubr.bf16.gmra.mrb[28].mxu1 %v268_v40 }
 0x1e7   :  { %v411_v59 = vpop.f32.mrb[0].mxu1 }
 0x1e8   :  { %v413_v61 = vpop.f32.mrb[1].mxu1  ;;  %v412_v63 = vadd.f32 %v411_v59, %v1586_v58 }
 0x1e9   :  { %v415_v62 = vpop.f32.mrb[2].mxu1  ;;  %v414_v2 = vadd.f32 %v413_v61, %v1588_v60 }
 0x1ea   :  { %v416_v0 = vadd.f32 %v415_v62, %v1586_v58  ;;  %v417_v1 = vpop.f32.mrb[3].mxu1 }
 0x1eb   :  { %v418_v3 = vadd.f32 %v417_v1, %v1588_v60 }
 0x1ec   :  { %v490_v4 = vpack.c.bf16 %v416_v0, %v412_v63 }
 0x1ed   :  { %v491_v5 = vpack.c.bf16 %v418_v3, %v414_v2 }
 0x1ee   :  { %v506_v8 = vmax.bf16 %v1391_v44, %v490_v4 }
 0x1ef   :  { %v421_v6 = vpop.f32.mrb[4].mxu1  ;;  %v507_v7 = vmax.bf16 %v1391_v44, %v491_v5 }
 0x1f0   :  { %v423_v9 = vpop.f32.mrb[5].mxu1  ;;  %v422_v11 = vadd.f32 %v421_v6, %v1586_v58 }
 0x1f1   :  { %v425_v10 = vpop.f32.mrb[6].mxu1  ;;  %689 = vmatprep.mubr.bf16.mxu0 %v507_v7  ;;  %v424_v14 = vadd.f32 %v423_v9, %v1588_v60 }
 0x1f2   :  { %v426_v12 = vadd.f32 %v425_v10, %v1586_v58  ;;  %v427_v13 = vpop.f32.mrb[7].mxu1  ;;  %690 = vmatmul.mubr.bf16.vlgmr.msra.gmra.mrb[16].mxu0 %v506_v8 }
 0x1f3   :  { %v428_v15 = vadd.f32 %v427_v13, %v1588_v60 }
 0x1f4   :  { %v492_v16 = vpack.c.bf16 %v426_v12, %v422_v11 }
 0x1f5   :  { %v493_v17 = vpack.c.bf16 %v428_v15, %v424_v14 }
 0x1f6   :  { %v508_v21 = vmax.bf16 %v1391_v44, %v492_v16 }
 0x1f7   :  { %v431_v18 = vpop.f32.mrb[8].mxu1  ;;  %v509_v19 = vmax.bf16 %v1391_v44, %v493_v17 }
 0x1f8   :  { %v433_v20 = vpop.f32.mrb[9].mxu1  ;;  %v432_v23 = vadd.f32 %v431_v18, %v1586_v58 }
 0x1f9   :  { %v435_v22 = vpop.f32.mrb[10].mxu1  ;;  %697 = vmatprep.mubr.bf16.mxu0 %v509_v19  ;;  %v434_v26 = vadd.f32 %v433_v20, %v1588_v60 }
 0x1fa   :  { %v436_v24 = vadd.f32 %v435_v22, %v1586_v58  ;;  %v437_v25 = vpop.f32.mrb[11].mxu1  ;;  %698 = vmatmul.mubr.bf16.gmra.mrb[20].mxu0 %v508_v21 }
 0x1fb   :  { %v438_v27 = vadd.f32 %v437_v25, %v1588_v60 }
 0x1fc   :  { %v494_v28 = vpack.c.bf16 %v436_v24, %v432_v23 }
 0x1fd   :  { %v495_v29 = vpack.c.bf16 %v438_v27, %v434_v26 }
 0x1fe   :  { %v510_v33 = vmax.bf16 %v1391_v44, %v494_v28 }
 0x1ff   :  { %v441_v30 = vpop.f32.mrb[12].mxu1  ;;  %v511_v31 = vmax.bf16 %v1391_v44, %v495_v29 }
 0x200   :  { %v443_v32 = vpop.f32.mrb[13].mxu1  ;;  %v442_v35 = vadd.f32 %v441_v30, %v1586_v58 }
 0x201   :  { %v445_v34 = vpop.f32.mrb[14].mxu1  ;;  %705 = vmatprep.mubr.bf16.mxu0 %v511_v31  ;;  %v444_v38 = vadd.f32 %v443_v32, %v1588_v60  ;;  %v1331_v31 = vld [vmem:[%s1718_s7 + $0x30] sm:$0xff]  }
 0x202   :  { %v446_v36 = vadd.f32 %v445_v34, %v1586_v58  ;;  %v447_v37 = vpop.f32.mrb[15].mxu1  ;;  %706 = vmatmul.mubr.bf16.gmra.mrb[24].mxu0 %v510_v33  ;;  %1232 = vmatprep.subr.bf16.mxu1 %v1331_v31 }
 0x203   :  { %v448_v39 = vadd.f32 %v447_v37, %v1588_v60  ;;  %1233 = vmatpush3.bf16.msra.mxu1 %v1331_v31 }
 0x204   :  { %v496_v40 = vpack.c.bf16 %v446_v36, %v442_v35  ;;  %v1647_v35 = vld [vmem:[%s1717_s6] ss:$0 sm:$0xff] }
 0x205   :  { %v497_v41 = vpack.c.bf16 %v448_v39, %v444_v38 }
 0x206   :  { %v512_v46 = vmax.bf16 %v1391_v44, %v496_v40 }
 0x207   :  { %v451_v42 = vpop.f32.mrb[16].mxu1  ;;  %v513_v43 = vmax.bf16 %v1391_v44, %v497_v41 }
 0x208   :  { %v453_v45 = vpop.f32.mrb[17].mxu1  ;;  %v452_v48 = vadd.f32 %v451_v42, %v1586_v58 }
 0x209   :  { %v455_v47 = vpop.f32.mrb[18].mxu1  ;;  %713 = vmatprep.mubr.bf16.mxu0 %v513_v43  ;;  %v454_v51 = vadd.f32 %v453_v45, %v1588_v60 }
 0x20a   :  { %v456_v49 = vadd.f32 %v455_v47, %v1586_v58  ;;  %v457_v50 = vpop.f32.mrb[19].mxu1  ;;  %714 = vmatmul.mubr.bf16.gmra.mrb[28].mxu0 %v512_v46 }
 0x20b   :  { %v458_v52 = vadd.f32 %v457_v50, %v1588_v60 }
 0x20c   :  { %v498_v53 = vpack.c.bf16 %v456_v49, %v452_v48 }
 0x20d   :  { %v499_v54 = vpack.c.bf16 %v458_v52, %v454_v51 }
 0x20e   :  { %v514_v59 = vmax.bf16 %v1391_v44, %v498_v53 }
 0x20f   :  { %v461_v55 = vpop.f32.mrb[20].mxu1  ;;  %v515_v56 = vmax.bf16 %v1391_v44, %v499_v54 }
 0x210   :  { %v463_v57 = vpop.f32.mrb[21].mxu1  ;;  %v462_v62 = vadd.f32 %v461_v55, %v1586_v58 }
 0x211   :  { %v465_v61 = vpop.f32.mrb[22].mxu1  ;;  %721 = vmatprep.mubr.bf16.mxu0 %v515_v56  ;;  %v464_v1 = vadd.f32 %v463_v57, %v1588_v60 }
 0x212   :  { %v466_v63 = vadd.f32 %v465_v61, %v1586_v58  ;;  %v467_v0 = vpop.f32.mrb[23].mxu1  ;;  %722 = vmatmul.mubr.bf16.gmra.mrb[32].mxu0 %v514_v59 }
 0x213   :  { %v468_v2 = vadd.f32 %v467_v0, %v1588_v60 }
 0x214   :  { %v500_v3 = vpack.c.bf16 %v466_v63, %v462_v62 }
 0x215   :  { %v501_v4 = vpack.c.bf16 %v468_v2, %v464_v1 }
 0x216   :  { %v516_v8 = vmax.bf16 %v1391_v44, %v500_v3 }
 0x217   :  { %v471_v5 = vpop.f32.mrb[24].mxu1  ;;  %v517_v6 = vmax.bf16 %v1391_v44, %v501_v4 }
 0x218   :  { %v473_v7 = vpop.f32.mrb[25].mxu1  ;;  %v472_v10 = vadd.f32 %v471_v5, %v1586_v58 }
 0x219   :  { %v475_v9 = vpop.f32.mrb[26].mxu1  ;;  %729 = vmatprep.mubr.bf16.mxu0 %v517_v6  ;;  %v474_v13 = vadd.f32 %v473_v7, %v1588_v60 }
 0x21a   :  { %v476_v11 = vadd.f32 %v475_v9, %v1586_v58  ;;  %v477_v12 = vpop.f32.mrb[27].mxu1  ;;  %730 = vmatmul.mubr.bf16.gmra.mrb[36].mxu0 %v516_v8 }
 0x21b   :  { %v478_v14 = vadd.f32 %v477_v12, %v1588_v60 }
 0x21c   :  { %v502_v15 = vpack.c.bf16 %v476_v11, %v472_v10 }
 0x21d   :  { %v503_v16 = vpack.c.bf16 %v478_v14, %v474_v13 }
 0x21e   :  { %v518_v20 = vmax.bf16 %v1391_v44, %v502_v15 }
 0x21f   :  { %v481_v17 = vpop.f32.mrb[28].mxu1  ;;  %v519_v18 = vmax.bf16 %v1391_v44, %v503_v16 }
 0x220   :  { %v483_v19 = vpop.f32.mrb[29].mxu1  ;;  %v482_v22 = vadd.f32 %v481_v17, %v1586_v58 }
 0x221   :  { %v485_v21 = vpop.f32.mrb[30].mxu1  ;;  %737 = vmatprep.mubr.bf16.mxu0 %v519_v18  ;;  %v484_v25 = vadd.f32 %v483_v19, %v1588_v60 }
 0x222   :  { %v486_v23 = vadd.f32 %v485_v21, %v1586_v58  ;;  %v487_v24 = vpop.f32.mrb[31].mxu1  ;;  %738 = vmatmul.mubr.bf16.gmra.mrb[40].mxu0 %v518_v20  ;;  %v1332_v58 = vld [vmem:[%s1718_s7 + $0x38] sm:$0xff]  }
 0x223   :  { %v488_v26 = vadd.f32 %v487_v24, %v1588_v60  ;;  %1234 = vmatprep.subr.bf16.mxu1 %v1332_v58 }
 0x224   :  { %v504_v27 = vpack.c.bf16 %v486_v23, %v482_v22  ;;  %1235 = vmatpush3.bf16.msra.mxu1 %v1332_v58 }
 0x225   :  { %v505_v28 = vpack.c.bf16 %v488_v26, %v484_v25 }
 0x226   :  { %v520_v30 = vmax.bf16 %v1391_v44, %v504_v27 }
 0x227   :  { %v521_v29 = vmax.bf16 %v1391_v44, %v505_v28 }
 0x229   :  { %745 = vmatprep.mubr.bf16.mxu0 %v521_v29 }
 0x22a   :  { %746 = vmatmul.mubr.bf16.gmra.mrb[44].mxu0 %v520_v30 }
 0x2c5   :  { %v1123_v60 = vpop.f32.mrb[16].mxu0 }
 0x2c6   :  { %v1124_v32 = vpop.f32.mrb[17].mxu0 }
 0x2c7   :  { %v1125_v33 = vadd.f32 %v1124_v32, %v1123_v60  ;;  %v1126_v34 = vpop.f32.mrb[18].mxu0 }
 0x2c8   :  { %v1127_v36 = vpop.f32.mrb[19].mxu0 }
 0x2c9   :  { %v1128_v37 = vadd.f32 %v1127_v36, %v1126_v34  ;;  %v692_v38 = vadd.f32 %v1125_v33, %v1647_v35 }
 0x2cb   :  { %v695_v39 = vadd.f32 %v1128_v37, %v1647_v35 }
 0x2cd   :  { %v754_v40 = vpack.c.bf16 %v695_v39, %v692_v38  ;;  %v1129_v41 = vpop.f32.mrb[20].mxu0 }
 0x2ce   :  { %v1130_v42 = vpop.f32.mrb[21].mxu0 }
 0x2cf   :  { %v1131_v43 = vadd.f32 %v1130_v42, %v1129_v41  ;;  %v1132_v45 = vpop.f32.mrb[22].mxu0  ;;  %v762_v46 = vmax.bf16 %v1391_v44, %v754_v40 }
 0x2d0   :  { %v1133_v47 = vpop.f32.mrb[23].mxu0 }
 0x2d1   :  { %v1134_v48 = vadd.f32 %v1133_v47, %v1132_v45  ;;  %1236 = vmatprep.mubr.bf16.mxu1 %v762_v46  ;;  %v700_v49 = vadd.f32 %v1131_v43, %v1647_v35 }
 0x2d3   :  { %v703_v50 = vadd.f32 %v1134_v48, %v1647_v35 }
 0x2d5   :  { %v755_v51 = vpack.c.bf16 %v703_v50, %v700_v49  ;;  %v1135_v52 = vpop.f32.mrb[24].mxu0 }
 0x2d6   :  { %v1136_v53 = vpop.f32.mrb[25].mxu0 }
 0x2d7   :  { %v763_v54 = vmax.bf16 %v1391_v44, %v755_v51  ;;  %v1137_v55 = vadd.f32 %v1136_v53, %v1135_v52  ;;  %v1138_v56 = vpop.f32.mrb[26].mxu0  ;;  %v1392_v51 = vmov 0.0   ;;  %v1084_v53 = vld [vmem:[%s1719_s8] ss:$0 sm:$0xff] }
 0x2d8   :  { %v1139_v57 = vpop.f32.mrb[27].mxu0  ;;  %1252 = vmatprep.subr.bf16.mxu0 %v1392_v51  ;;  %1268 = vmatprep.mubr.msk.bf16.mxu0 %vm1393_vm1, %v1392_v51 }
 0x2d9   :  { %v1140_v59 = vadd.f32 %v1139_v57, %v1138_v56  ;;  %1237 = vmatmul.mubr.bf16.vlgmr.msra.gmra.mrb[32].mxu1 %v763_v54  ;;  %v708_v61 = vadd.f32 %v1137_v55, %v1647_v35 }
 0x2db   :  { %v711_v62 = vadd.f32 %v1140_v59, %v1647_v35 }
 0x2dd   :  { %v756_v63 = vpack.c.bf16 %v711_v62, %v708_v61  ;;  %v1141_v0 = vpop.f32.mrb[28].mxu0 }
 0x2de   :  { %v1142_v1 = vpop.f32.mrb[29].mxu0 }
 0x2df   :  { %v1143_v2 = vadd.f32 %v1142_v1, %v1141_v0  ;;  %v1144_v3 = vpop.f32.mrb[30].mxu0  ;;  %v764_v4 = vmax.bf16 %v1391_v44, %v756_v63 }
 0x2e0   :  { %v1145_v5 = vpop.f32.mrb[31].mxu0 }
 0x2e1   :  { %v1146_v6 = vadd.f32 %v1145_v5, %v1144_v3  ;;  %1240 = vmatprep.mubr.bf16.mxu1 %v764_v4  ;;  %v716_v7 = vadd.f32 %v1143_v2, %v1647_v35 }
 0x2e3   :  { %v719_v8 = vadd.f32 %v1146_v6, %v1647_v35 }
 0x2e5   :  { %v757_v9 = vpack.c.bf16 %v719_v8, %v716_v7  ;;  %v1147_v10 = vpop.f32.mrb[32].mxu0 }
 0x2e6   :  { %v1148_v11 = vpop.f32.mrb[33].mxu0 }
 0x2e7   :  { %v1149_v12 = vadd.f32 %v1148_v11, %v1147_v10  ;;  %v1150_v13 = vpop.f32.mrb[34].mxu0  ;;  %v765_v14 = vmax.bf16 %v1391_v44, %v757_v9 }
 0x2e8   :  { %v1151_v15 = vpop.f32.mrb[35].mxu0 }
 0x2e9   :  { %v1152_v16 = vadd.f32 %v1151_v15, %v1150_v13  ;;  %1241 = vmatmul.mubr.bf16.gmra.mrb[36].mxu1 %v765_v14  ;;  %v724_v17 = vadd.f32 %v1149_v12, %v1647_v35 }
 0x2eb   :  { %v727_v18 = vadd.f32 %v1152_v16, %v1647_v35 }
 0x2ed   :  { %v758_v19 = vpack.c.bf16 %v727_v18, %v724_v17  ;;  %v1153_v20 = vpop.f32.mrb[36].mxu0 }
 0x2ee   :  { %v1154_v21 = vpop.f32.mrb[37].mxu0 }
 0x2ef   :  { %v1155_v22 = vadd.f32 %v1154_v21, %v1153_v20  ;;  %v1156_v23 = vpop.f32.mrb[38].mxu0  ;;  %v766_v24 = vmax.bf16 %v1391_v44, %v758_v19 }
 0x2f0   :  { %v1157_v25 = vpop.f32.mrb[39].mxu0 }
 0x2f1   :  { %v1158_v26 = vadd.f32 %v1157_v25, %v1156_v23  ;;  %1244 = vmatprep.mubr.bf16.mxu1 %v766_v24  ;;  %v732_v27 = vadd.f32 %v1155_v22, %v1647_v35 }
 0x2f3   :  { %v735_v28 = vadd.f32 %v1158_v26, %v1647_v35 }
 0x2f5   :  { %v759_v29 = vpack.c.bf16 %v735_v28, %v732_v27  ;;  %v1159_v30 = vpop.f32.mrb[40].mxu0 }
 0x2f6   :  { %v1160_v31 = vpop.f32.mrb[41].mxu0 }
 0x2f7   :  { %v1161_v58 = vadd.f32 %v1160_v31, %v1159_v30  ;;  %v1162_v60 = vpop.f32.mrb[42].mxu0  ;;  %v767_v32 = vmax.bf16 %v1391_v44, %v759_v29 }
 0x2f8   :  { %v1163_v33 = vpop.f32.mrb[43].mxu0 }
 0x2f9   :  { %v1164_v34 = vadd.f32 %v1163_v33, %v1162_v60  ;;  %1245 = vmatmul.mubr.bf16.gmra.mrb[40].mxu1 %v767_v32  ;;  %v740_v36 = vadd.f32 %v1161_v58, %v1647_v35 }
 0x2fb   :  { %v743_v37 = vadd.f32 %v1164_v34, %v1647_v35 }
 0x2fd   :  { %v760_v38 = vpack.c.bf16 %v743_v37, %v740_v36  ;;  %v1165_v39 = vpop.f32.mrb[44].mxu0 }
 0x2fe   :  { %v1166_v40 = vpop.f32.mrb[45].mxu0 }
 0x2ff   :  { %v1167_v41 = vadd.f32 %v1166_v40, %v1165_v39  ;;  %v1168_v42 = vpop.f32.mrb[46].mxu0  ;;  %v768_v43 = vmax.bf16 %v1391_v44, %v760_v38 }
 0x300   :  { %v1169_v45 = vpop.f32.mrb[47].mxu0 }
 0x301   :  { %v1170_v46 = vadd.f32 %v1169_v45, %v1168_v42  ;;  %1248 = vmatprep.mubr.bf16.mxu1 %v768_v43  ;;  %v748_v47 = vadd.f32 %v1167_v41, %v1647_v35 }
 0x303   :  { %v751_v48 = vadd.f32 %v1170_v46, %v1647_v35  ;;  %v954_v46 = vld [vmem:[%s1720_s9] sm:$0xf] }
 0x305   :  { %v761_v49 = vpack.c.bf16 %v751_v48, %v748_v47  ;;  %v1023_v47 = vstv %s1721_s10 }
 0x307   :  { %v769_v50 = vmax.bf16 %v1391_v44, %v761_v49 }
 0x309   :  { %1249 = vmatmul.mubr.bf16.gmra.mrb[44].mxu1 %v769_v50 }
 0x3ac   :  { %v1238_v52 = vpop.f32.mrb[32].mxu1 }
 0x3ad   :  { %v875_v54 = vpop.f32.mrb[33].mxu1  ;;  %v884_v56 = vadd.f32 %v1238_v52, %v1084_v53 }
 0x3ae   :  { %v1239_v55 = vpop.f32.mrb[34].mxu1  ;;  %v876_v59 = vadd.f32 %v1084_v53, %v875_v54 }
 0x3af   :  { %v887_v57 = vadd.f32 %v1239_v55, %v1084_v53  ;;  %v878_v35 = vpop.f32.mrb[35].mxu1 }
 0x3b0   :  { %v879_v61 = vadd.f32 %v1084_v53, %v878_v35 }
 0x3b1   :  { %v939_v62 = vpack.c.bf16 %v887_v57, %v884_v56 }
 0x3b2   :  { %v938_v63 = vpack.c.bf16 %v879_v61, %v876_v59 }
 0x3b3   :  { %v947_v2 = vmax.bf16 %v1391_v44, %v939_v62 }
 0x3b4   :  { %v946_v0 = vmax.bf16 %v1391_v44, %v938_v63 }
 0x3b5   :  { %v962_v6 = vsel %vm131_vm0, %v947_v2, 0 }
 0x3b6   :  { %v959_v1 = vsel %vm131_vm0, %v946_v0, 0 }
 0x3b7   :  { %1253 = vmatpush3.bf16.xpose.msra.mxu0 %v959_v1 }
 0x3b8   :  { %1254 = vmatprep.subr.bf16.mxu0 %v1392_v51 }
 0x3bc   :  { %v1242_v3 = vpop.f32.mrb[36].mxu1 }
 0x3bd   :  { %v891_v4 = vpop.f32.mrb[37].mxu1  ;;  %v900_v7 = vadd.f32 %v1242_v3, %v1084_v53 }
 0x3be   :  { %v1243_v5 = vpop.f32.mrb[38].mxu1  ;;  %v892_v10 = vadd.f32 %v1084_v53, %v891_v4 }
 0x3bf   :  { %v903_v8 = vadd.f32 %v1243_v5, %v1084_v53  ;;  %v894_v9 = vpop.f32.mrb[39].mxu1  ;;  %1255 = vmatpush3.bf16.xpose.msra.mxu0 %v962_v6 }
 0x3c0   :  { %v895_v11 = vadd.f32 %v1084_v53, %v894_v9  ;;  %1256 = vmatprep.subr.bf16.mxu0 %v1392_v51 }
 0x3c1   :  { %v941_v12 = vpack.c.bf16 %v903_v8, %v900_v7 }
 0x3c2   :  { %v940_v13 = vpack.c.bf16 %v895_v11, %v892_v10 }
 0x3c3   :  { %v949_v16 = vmax.bf16 %v1391_v44, %v941_v12 }
 0x3c4   :  { %v948_v14 = vmax.bf16 %v1391_v44, %v940_v13 }
 0x3c5   :  { %v968_v20 = vsel %vm131_vm0, %v949_v16, 0 }
 0x3c6   :  { %v965_v15 = vsel %vm131_vm0, %v948_v14, 0 }
 0x3c7   :  { %1257 = vmatpush3.bf16.xpose.msra.mxu0 %v965_v15 }
 0x3c8   :  { %1258 = vmatprep.subr.bf16.mxu0 %v1392_v51 }
 0x3cc   :  { %v1246_v17 = vpop.f32.mrb[40].mxu1 }
 0x3cd   :  { %v907_v18 = vpop.f32.mrb[41].mxu1  ;;  %v916_v21 = vadd.f32 %v1246_v17, %v1084_v53 }
 0x3ce   :  { %v1247_v19 = vpop.f32.mrb[42].mxu1  ;;  %v908_v24 = vadd.f32 %v1084_v53, %v907_v18 }
 0x3cf   :  { %v919_v22 = vadd.f32 %v1247_v19, %v1084_v53  ;;  %v910_v23 = vpop.f32.mrb[43].mxu1  ;;  %1259 = vmatpush3.bf16.xpose.msra.mxu0 %v968_v20 }
 0x3d0   :  { %v911_v25 = vadd.f32 %v1084_v53, %v910_v23  ;;  %1260 = vmatprep.subr.bf16.mxu0 %v1392_v51 }
 0x3d1   :  { %v943_v26 = vpack.c.bf16 %v919_v22, %v916_v21 }
 0x3d2   :  { %v942_v27 = vpack.c.bf16 %v911_v25, %v908_v24 }
 0x3d3   :  { %v951_v30 = vmax.bf16 %v1391_v44, %v943_v26 }
 0x3d4   :  { %v950_v28 = vmax.bf16 %v1391_v44, %v942_v27 }
 0x3d5   :  { %v974_v32 = vsel %vm131_vm0, %v951_v30, 0 }
 0x3d6   :  { %v971_v29 = vsel %vm131_vm0, %v950_v28, 0 }
 0x3d7   :  { %1261 = vmatpush3.bf16.xpose.msra.mxu0 %v971_v29 }
 0x3d8   :  { %1262 = vmatprep.subr.bf16.mxu0 %v1392_v51 }
 0x3dc   :  { %v1250_v31 = vpop.f32.mrb[44].mxu1 }
 0x3dd   :  { %v923_v58 = vpop.f32.mrb[45].mxu1  ;;  %v932_v33 = vadd.f32 %v1250_v31, %v1084_v53 }
 0x3de   :  { %v1251_v60 = vpop.f32.mrb[46].mxu1  ;;  %v924_v37 = vadd.f32 %v1084_v53, %v923_v58 }
 0x3df   :  { %v935_v34 = vadd.f32 %v1251_v60, %v1084_v53  ;;  %v926_v36 = vpop.f32.mrb[47].mxu1  ;;  %1263 = vmatpush3.bf16.xpose.msra.mxu0 %v974_v32 }
 0x3e0   :  { %v927_v38 = vadd.f32 %v1084_v53, %v926_v36  ;;  %1264 = vmatprep.subr.bf16.mxu0 %v1392_v51 }
 0x3e1   :  { %v945_v39 = vpack.c.bf16 %v935_v34, %v932_v33 }
 0x3e2   :  { %v944_v40 = vpack.c.bf16 %v927_v38, %v924_v37 }
 0x3e3   :  { %v953_v43 = vmax.bf16 %v1391_v44, %v945_v39 }
 0x3e4   :  { %v952_v41 = vmax.bf16 %v1391_v44, %v944_v40 }
 0x3e5   :  { %v980_v45 = vsel %vm131_vm0, %v953_v43, 0 }
 0x3e6   :  { %v977_v42 = vsel %vm131_vm0, %v952_v41, 0 }
 0x3e7   :  { %1265 = vmatpush3.bf16.xpose.msra.mxu0 %v977_v42 }
 0x3e8   :  { %1266 = vmatprep.subr.bf16.mxu0 %v1392_v51 }
 0x3ef   :  { %1267 = vmatpush3.bf16.xpose.msra.mxu0 %v980_v45 }
 0x3f6   :  { %1269 = vmatmul.mubr.msk.bf16.vlgmr.msra.gmra.mrb[48].mxu0 %vm131_vm0, %v954_v46 }
 0x4c9   :  { %v1016_v48 = vpop.f32.mrb[48].mxu0 }
 0x4ca   :  { %v1024_v49 = vadd.f32 %v1023_v47, %v1016_v48  ;;  %v1270_v50 = vpop.f32.mrb[49].mxu0 }
 0x4cb   :  { %v1019_v52 = vpop.f32.mrb[50].mxu0 }
 0x4cc   :  { %v1094_v51 = vmul.f32 -1.442695, %v1024_v49  ;;  %v1271_v53 = vpop.f32.mrb[51].mxu0 }
 0x4ce   :  { %1333 = vpow2.f32 %v1094_v51 }
 0x4d8   :  { %v1334_v44 = vpop.eup %1333 }
 0x4d9   :  { %v1028_v54 = vadd.f32 1.0, %v1334_v44 }
 0x4db   :  { %1335 = vrcp.f32 %v1028_v54 }
 0x4e5   :  { %v1336_v55 = vpop.eup %1335 }
 0x4e6   :  { %1031 = vst [vmem:[%s1722_s11] sm:$0x1] %v1336_v55 }
 0x4e7   :  { %1036 = vsyncpa [#allocation4], 1 }
 0x4e8   :  { %1037 = vsyncpa [#allocation6], 1 }

</bundles_post_ra>
